<compile_context>
chip_gen: v5e
topology: v5e:2x2
jax: 0.10.0
libtpu: 0.0.40
codegen_flags: <defaults>
</compile_context>

<pallas_src>
import math
import functools

import jax
import jax.numpy as jnp
from jax.experimental import pallas as pl
from jax.experimental.pallas import tpu as pltpu

_LANE = 128
_SUBLANE_BF16 = 16  # bf16 packs 2 rows per sublane -> keep row blocks %16 == 0


def _round_up(x, m):
    return (x + m - 1) // m * m


def _apply_activation(name, x):
    # make_mlp appends the activation after EVERY Linear (including the last).
    if name == "relu":
        return jnp.maximum(x, 0.0)
    if name == "leakyrelu":
        # make_mlp uses nn.LeakyReLU(negative_slope=0.2) explicitly.
        return jnp.where(x >= 0.0, x, 0.2 * x)
    if name == "sigmoid":
        return jax.nn.sigmoid(x)
    # TODO(synk): 'prelu' has a learned slope parameter; not implemented here.
    raise NotImplementedError(f"activation {name!r} not supported")


# ------------------------------- Pallas kernel ------------------------------

def _mlp_kernel(*refs, num_layers, activation, has_emb):
    """refs = (h, [emb], w0h, [w0c], b0, w1, b1, ..., out_ref).

    Weights are bf16 (padded with zero rows/cols); biases f32 (1, n_pad).
    Matmuls accumulate in f32; bias/activation math stays f32.
    """
    out_ref = refs[-1]
    idx = 0
    h = refs[idx][...]            # (Bblk, Dh) bf16
    idx += 1
    if has_emb:
        e = refs[idx][...]        # (Bblk, De) bf16
        idx += 1

    # layer 0 (concat fused: [h, emb] @ [W0h; W0c] == h@W0h + emb@W0c)
    w0h = refs[idx][...]; idx += 1
    if has_emb:
        w0c = refs[idx][...]; idx += 1
    b0 = refs[idx][...]; idx += 1
    acc = jnp.dot(h, w0h, preferred_element_type=jnp.float32)
    if has_emb:
        acc = acc + jnp.dot(e, w0c, preferred_element_type=jnp.float32)
    acc = acc + b0
    hf = _apply_activation(activation, acc)

    # remaining layers
    for _ in range(1, num_layers):
        w = refs[idx][...]; idx += 1          # (Kpad, Npad) bf16
        b = refs[idx][...]; idx += 1          # (1, Npad) f32
        acc = jnp.dot(hf.astype(w.dtype), w,
                      preferred_element_type=jnp.float32) + b
        hf = _apply_activation(activation, acc)

    out_ref[...] = hf.astype(out_ref.dtype)


# --------------------- one-time parameter preparation -----------------------

def _prep_params(params, dh, de):
    """Split layer-0 weight into hidden/class parts, pad N dims (and K dims for
    l>=1) to lane multiples, cast weights to bf16, biases to f32 (1, Npad).

    Zero padding is inert: padded weight rows/cols are zero, so padded lanes of
    intermediate activations (whatever their value, e.g. sigmoid(0)=0.5) never
    contribute to real output columns.
    """
    dims = [dh + de] + [w.shape[1] for w, _ in params]
    pdims = [None] + [_round_up(d, _LANE) for d in dims[1:]]
    prepped = []
    for l, (w, b) in enumerate(params):
        w = w.astype(jnp.float32)
        b = b.astype(jnp.float32)
        npad = pdims[l + 1]
        if l == 0:
            assert w.shape[0] == dh + de
            w0h = jnp.zeros((dh, npad), jnp.float32)
            w0h = w0h.at[:, : w.shape[1]].set(w[:dh])
            ws = [w0h.astype(jnp.bfloat16)]
            if de > 0:
                w0c = jnp.zeros((de, npad), jnp.float32)
                w0c = w0c.at[:, : w.shape[1]].set(w[dh:])
                ws.append(w0c.astype(jnp.bfloat16))
        else:
            kpad = pdims[l]
            wp = jnp.zeros((kpad, npad), jnp.float32)
            wp = wp.at[: w.shape[0], : w.shape[1]].set(w)
            ws = [wp.astype(jnp.bfloat16)]
        bp = jnp.zeros((1, npad), jnp.float32).at[0, : b.shape[0]].set(b)
        prepped.append((ws, bp))
    return prepped, dims, pdims


# ------------------------------ fused MLP call -------------------------------

def mlp_forward_pallas(h, emb, prepped, dims, pdims, *, activation,
                       block_rows=256):
    """h: (B, Dh) f32/bf16, emb: (B, De) or None. Returns (B, dims[-1]) f32."""
    B, Dh = h.shape
    has_emb = emb is not None
    De = emb.shape[1] if has_emb else 0
    num_layers = len(prepped)

    # Batch blocking: multiple of 16 (bf16 sublane packing); >=2 grid steps for
    # large B (v7x megacore), cap at block_rows so h stays in the vreg file.
    bblk = min(_round_up(block_rows, _SUBLANE_BF16),
               _round_up(B, _SUBLANE_BF16))
    bpad = _round_up(B, bblk)
    grid = (bpad // bblk,)

    def _pad_rows(a):
        return a if bpad == a.shape[0] else jnp.pad(a, ((0, bpad - a.shape[0]),
                                                        (0, 0)))

    operands = [_pad_rows(h.astype(jnp.bfloat16))]
    in_specs = [pl.BlockSpec((bblk, Dh), lambda i: (i, 0))]
    if has_emb:
        operands.append(_pad_rows(emb.astype(jnp.bfloat16)))
        in_specs.append(pl.BlockSpec((bblk, De), lambda i: (i, 0)))

    for ws, bp in prepped:
        for w in ws:
            operands.append(w)
            in_specs.append(pl.BlockSpec(w.shape, lambda i: (0, 0)))
        operands.append(bp)
        in_specs.append(pl.BlockSpec(bp.shape, lambda i: (0, 0)))

    out_specs = pl.BlockSpec((bblk, pdims[-1]), lambda i: (i, 0))

    # VMEM limit: true footprint (double-buffered I/O + resident weights) plus
    # ~2 MiB headroom; no artificial 16 MiB floor.
    weight_bytes = sum(int(o.size) * o.dtype.itemsize
                       for ws, bp in prepped for o in (*ws, bp))
    io_bytes = bblk * (Dh + De) * 2 + bblk * pdims[-1] * 4
    act_bytes = 2 * bblk * max(pdims[1:]) * 4
    vmem_limit = int(min(2 * (weight_bytes + io_bytes) + act_bytes + (2 << 20),
                         32 << 20))

    kernel = functools.partial(_mlp_kernel, num_layers=num_layers,
                               activation=activation, has_emb=has_emb)
    out = pl.pallas_call(
        kernel,
        out_shape=jax.ShapeDtypeStruct((bpad, pdims[-1]), jnp.float32),
        grid_spec=pltpu.PrefetchScalarGridSpec(
            num_scalar_prefetch=0,
            grid=grid,
            in_specs=in_specs,
            out_specs=out_specs,
        ),
        compiler_params=pltpu.CompilerParams(
            dimension_semantics=("parallel",),
            vmem_limit_bytes=vmem_limit),
    )(*operands)
    return out[:B, : dims[-1]]


# --------------------------- MLPDecoder (Pallas) -----------------------------

class MLPDecoderPallas:
    """Forward-pass port of MLPDecoder (inference; dropout = identity)."""

    def __init__(self, decoder_params, *, activation, hidden_flat_dim,
                 cond_type=None, n_classes=None, emb_table=None,
                 block_rows=256):
        self.activation = activation
        self.cond_type = cond_type
        self.n_classes = n_classes
        self.emb_table = emb_table
        self.block_rows = block_rows
        self.class_emb_dim = 0
        if cond_type is not None:
            if cond_type not in ("embedding", "one_hot"):
                raise NotImplementedError(cond_type)
            self.class_emb_dim = (emb_table.shape[1] if cond_type == "embedding"
                                  else n_classes)
        # One-time parameter prep (hoisted out of the forward path).
        self._prepped, self._dims, self._pdims = _prep_params(
            decoder_params, hidden_flat_dim, self.class_emb_dim)
        # Entire forward under one jit -> single dispatch per call.
        self._forward = jax.jit(self._forward_impl)

    def __call__(self, hidden_cell_state, labels=None):
        return self._forward(hidden_cell_state, labels)

    def _forward_impl(self, hidden_cell_state, labels):
        if isinstance(hidden_cell_state, tuple):
            h = jnp.squeeze(hidden_cell_state[0], axis=0)   # h_n.squeeze(0)
        else:
            h = hidden_cell_state
        h = h.reshape(h.shape[0], -1)                       # flatten(start_dim=1)
        # TODO(synk): visual branch (CNNFeatureExtractor) not implemented;
        # corresponds to constructing MLPDecoder with visual_feature_cfg=None.
        emb = None
        if self.class_emb_dim > 0:
            lab = labels[:, 0].astype(jnp.int32)
            if self.cond_type == "one_hot":
                emb = jax.nn.one_hot(lab, self.n_classes, dtype=jnp.float32)
            else:  # 'embedding' -> LatentEmbedding (L2-normalized, no eps, as in the module)
                e = self.emb_table[lab]
                emb = e / jnp.linalg.norm(e, axis=1, keepdims=True)
        return mlp_forward_pallas(h, emb, self._prepped, self._dims,
                                  self._pdims, activation=self.activation,
                                  block_rows=self.block_rows)


# ------------------------------ pure-JAX reference ---------------------------

def cat_class_emb(x, labels):
    if labels.ndim != x.ndim:
        class_emb_inp = jnp.repeat(labels[:, None, :], x.shape[1], axis=1)
    else:
        class_emb_inp = labels
    return jnp.concatenate([x, class_emb_inp], axis=-1)


def mlp_decoder_reference(hidden_cell_state, decoder_params, *, activation,
                          cond_type=None, n_classes=None, emb_table=None,
                          labels=None):
    if isinstance(hidden_cell_state, tuple):
        h = jnp.squeeze(hidden_cell_state[0], axis=0)
    else:
        h = hidden_cell_state
    h = h.reshape(h.shape[0], -1)
    if cond_type is not None:
        lab = labels[:, 0].astype(jnp.int32)
        if cond_type == "one_hot":
            ce = jax.nn.one_hot(lab, n_classes, dtype=jnp.float32)
        else:
            e = emb_table[lab]
            ce = e / jnp.linalg.norm(e, axis=1, keepdims=True)
        h = cat_class_emb(h, ce)
    for w, b in decoder_params:
        h = _apply_activation(activation, h @ w + b)
    return h


# ----------------------------- param construction ----------------------------

def make_decoder_params(key, dims):
    """PyTorch nn.Linear default init, weights stored (in, out)."""
    params = []
    for din, dout in zip(dims[:-1], dims[1:]):
        key, k1, k2 = jax.random.split(key, 3)
        bound = 1.0 / math.sqrt(din)
        w = jax.random.uniform(k1, (din, dout), jnp.float32, -bound, bound)
        b = jax.random.uniform(k2, (dout,), jnp.float32, -bound, bound)
        params.append((w, b))
    return params


# ----------------------------------- main ------------------------------------

if __name__ == "__main__":
    # MLPDecoder config:
    #   cfg = {'mlp_dims': [64, 128], 'activation': 'relu', 'dropout': 0.1}
    #   visual_feature_cfg = None
    #   cfg_condition = {'name': 'embedding', 'n_labels': 4, 'embedding_dim': 16}
    #   encoder_hidden_dimension = 32, prediction_len = 12  (-> out dim 24)
    B, H_enc, T = 2, 32, 8
    mlp_dims = [64, 128]
    prediction_len = 12
    n_labels, emb_dim = 4, 16
    activation = "relu"

    predictor_dims = [H_enc + 0 + emb_dim] + list(mlp_dims) + [prediction_len * 2]
    # -> [48, 64, 128, 24]

    key = jax.random.PRNGKey(0)
    key, kh, kc, kl, ke, kp = jax.random.split(key, 6)
    h0 = jax.random.normal(kh, (1, B, H_enc), jnp.float32)      # LSTM hidden
    c0 = jax.random.normal(kc, (1, B, H_enc), jnp.float32)      # LSTM cell
    labels = jax.random.randint(kl, (B, T), 0, n_labels)        # per-step labels
    emb_table = jax.random.normal(ke, (n_labels, emb_dim), jnp.float32)
    decoder_params = make_decoder_params(kp, predictor_dims)

    decoder = MLPDecoderPallas(
        decoder_params, activation=activation, hidden_flat_dim=H_enc,
        cond_type="embedding", n_classes=n_labels, emb_table=emb_table)

    out = decoder((h0, c0), labels)
    out = jax.block_until_ready(out)

    ref = mlp_decoder_reference((h0, c0), decoder_params, activation=activation,
                                cond_type="embedding", n_classes=n_labels,
                                emb_table=emb_table, labels=labels)
    assert out.shape == (B, prediction_len * 2), out.shape
    # bf16 matmul inputs / f32 accumulation -> ~1% tolerance vs f32 reference.
    assert jnp.allclose(out, ref, rtol=3e-2, atol=3e-2), \
        f"max abs diff {float(jnp.max(jnp.abs(out - ref)))}"

    print("KERNEL_OK")
</pallas_src>

<mosaic_0001>
module attributes {stable_mosaic.version = 11 : i64} {
  func.func @_mlp_kernel(%arg0: i32, %arg1: memref<16x32xbf16, #tpu.memory_space<vmem>>, %arg2: memref<16x16xbf16, #tpu.memory_space<vmem>>, %arg3: memref<32x128xbf16, #tpu.memory_space<vmem>>, %arg4: memref<16x128xbf16, #tpu.memory_space<vmem>>, %arg5: memref<1x128xf32, #tpu.memory_space<vmem>>, %arg6: memref<128x128xbf16, #tpu.memory_space<vmem>>, %arg7: memref<1x128xf32, #tpu.memory_space<vmem>>, %arg8: memref<128x128xbf16, #tpu.memory_space<vmem>>, %arg9: memref<1x128xf32, #tpu.memory_space<vmem>>, %arg10: memref<16x128xf32, #tpu.memory_space<vmem>>) attributes {dimension_semantics = [#tpu.dimension_semantics<parallel>], iteration_bounds = array<i64: 1>, scalar_prefetch = 0 : i64, scratch_operands = 0 : i64, tpu.core_type = #tpu.core_type<tc>, window_params = [{transform_indices = @transform_0, window_bounds = array<i64: 16, 32>}, {transform_indices = @transform_1, window_bounds = array<i64: 16, 16>}, {pipeline_mode = #tpu.pipeline_mode<synchronous>, transform_indices = @transform_2, window_bounds = array<i64: 32, 128>}, {pipeline_mode = #tpu.pipeline_mode<synchronous>, transform_indices = @transform_3, window_bounds = array<i64: 16, 128>}, {pipeline_mode = #tpu.pipeline_mode<synchronous>, transform_indices = @transform_4, window_bounds = array<i64: 1, 128>}, {pipeline_mode = #tpu.pipeline_mode<synchronous>, transform_indices = @transform_5, window_bounds = array<i64: 128, 128>}, {pipeline_mode = #tpu.pipeline_mode<synchronous>, transform_indices = @transform_6, window_bounds = array<i64: 1, 128>}, {pipeline_mode = #tpu.pipeline_mode<synchronous>, transform_indices = @transform_7, window_bounds = array<i64: 128, 128>}, {pipeline_mode = #tpu.pipeline_mode<synchronous>, transform_indices = @transform_8, window_bounds = array<i64: 1, 128>}, {transform_indices = @transform_9, window_bounds = array<i64: 16, 128>}]} {
    %c0 = arith.constant 0 : index
    %c0_0 = arith.constant 0 : index
    %0 = vector.load %arg1[%c0, %c0_0] : memref<16x32xbf16, #tpu.memory_space<vmem>>, vector<16x32xbf16>
    %c0_1 = arith.constant 0 : index
    %c0_2 = arith.constant 0 : index
    %1 = vector.load %arg2[%c0_1, %c0_2] : memref<16x16xbf16, #tpu.memory_space<vmem>>, vector<16x16xbf16>
    %c0_3 = arith.constant 0 : index
    %c0_4 = arith.constant 0 : index
    %2 = vector.load %arg3[%c0_3, %c0_4] : memref<32x128xbf16, #tpu.memory_space<vmem>>, vector<32x128xbf16>
    %c0_5 = arith.constant 0 : index
    %c0_6 = arith.constant 0 : index
    %3 = vector.load %arg4[%c0_5, %c0_6] : memref<16x128xbf16, #tpu.memory_space<vmem>>, vector<16x128xbf16>
    %c0_7 = arith.constant 0 : index
    %c0_8 = arith.constant 0 : index
    %4 = vector.load %arg5[%c0_7, %c0_8] : memref<1x128xf32, #tpu.memory_space<vmem>>, vector<1x128xf32>
    %cst = arith.constant dense<0.000000e+00> : vector<16x128xf32>
    %5 = tpu.matmul %0, %2, %cst {dimension_numbers = #tpu.dot_dimension_numbers<[1], [0], [0], [1], [0, 0, 1, 1], [], []>} : vector<16x32xbf16>, vector<32x128xbf16>, vector<16x128xf32> -> vector<16x128xf32>
    %cst_9 = arith.constant dense<0.000000e+00> : vector<16x128xf32>
    %6 = tpu.matmul %1, %3, %cst_9 {dimension_numbers = #tpu.dot_dimension_numbers<[1], [0], [0], [1], [0, 0, 1, 1], [], []>} : vector<16x16xbf16>, vector<16x128xbf16>, vector<16x128xf32> -> vector<16x128xf32>
    %7 = arith.addf %5, %6 : vector<16x128xf32>
    %8 = vector.broadcast %4 : vector<1x128xf32> to vector<16x128xf32>
    %9 = arith.addf %7, %8 : vector<16x128xf32>
    %cst_10 = arith.constant 0.000000e+00 : f32
    %10 = vector.broadcast %cst_10 : f32 to vector<16x128xf32>
    %11 = arith.maximumf %9, %10 : vector<16x128xf32>
    %c0_11 = arith.constant 0 : index
    %c0_12 = arith.constant 0 : index
    %12 = vector.load %arg6[%c0_11, %c0_12] : memref<128x128xbf16, #tpu.memory_space<vmem>>, vector<128x128xbf16>
    %c0_13 = arith.constant 0 : index
    %c0_14 = arith.constant 0 : index
    %13 = vector.load %arg7[%c0_13, %c0_14] : memref<1x128xf32, #tpu.memory_space<vmem>>, vector<1x128xf32>
    %14 = arith.truncf %11 : vector<16x128xf32> to vector<16x128xbf16>
    %cst_15 = arith.constant dense<0.000000e+00> : vector<16x128xf32>
    %15 = tpu.matmul %14, %12, %cst_15 {dimension_numbers = #tpu.dot_dimension_numbers<[1], [0], [0], [1], [0, 0, 1, 1], [], []>} : vector<16x128xbf16>, vector<128x128xbf16>, vector<16x128xf32> -> vector<16x128xf32>
    %16 = vector.broadcast %13 : vector<1x128xf32> to vector<16x128xf32>
    %17 = arith.addf %15, %16 : vector<16x128xf32>
    %cst_16 = arith.constant 0.000000e+00 : f32
    %18 = vector.broadcast %cst_16 : f32 to vector<16x128xf32>
    %19 = arith.maximumf %17, %18 : vector<16x128xf32>
    %c0_17 = arith.constant 0 : index
    %c0_18 = arith.constant 0 : index
    %20 = vector.load %arg8[%c0_17, %c0_18] : memref<128x128xbf16, #tpu.memory_space<vmem>>, vector<128x128xbf16>
    %c0_19 = arith.constant 0 : index
    %c0_20 = arith.constant 0 : index
    %21 = vector.load %arg9[%c0_19, %c0_20] : memref<1x128xf32, #tpu.memory_space<vmem>>, vector<1x128xf32>
    %22 = arith.truncf %19 : vector<16x128xf32> to vector<16x128xbf16>
    %cst_21 = arith.constant dense<0.000000e+00> : vector<16x128xf32>
    %23 = tpu.matmul %22, %20, %cst_21 {dimension_numbers = #tpu.dot_dimension_numbers<[1], [0], [0], [1], [0, 0, 1, 1], [], []>} : vector<16x128xbf16>, vector<128x128xbf16>, vector<16x128xf32> -> vector<16x128xf32>
    %24 = vector.broadcast %21 : vector<1x128xf32> to vector<16x128xf32>
    %25 = arith.addf %23, %24 : vector<16x128xf32>
    %cst_22 = arith.constant 0.000000e+00 : f32
    %26 = vector.broadcast %cst_22 : f32 to vector<16x128xf32>
    %27 = arith.maximumf %25, %26 : vector<16x128xf32>
    %c0_23 = arith.constant 0 : index
    %c0_24 = arith.constant 0 : index
    %28 = vector.load %arg10[%c0_23, %c0_24] : memref<16x128xf32, #tpu.memory_space<vmem>>, vector<16x128xf32>
    tpu.vector_store %arg10[%c0_23, %c0_24], %27 {strides = array<i32>} : memref<16x128xf32, #tpu.memory_space<vmem>>, vector<16x128xf32>,
    return
  }
  func.func @transform_0(%arg0: i32) -> (i32, i32) {
    %c0_i32 = arith.constant 0 : i32
    %c0_i32_0 = arith.constant 0 : i32
    return %arg0, %c0_i32 : i32, i32
  }
  func.func @transform_1(%arg0: i32) -> (i32, i32) {
    %c0_i32 = arith.constant 0 : i32
    %c0_i32_0 = arith.constant 0 : i32
    return %arg0, %c0_i32 : i32, i32
  }
  func.func @transform_2(%arg0: i32) -> (i32, i32) {
    %c0_i32 = arith.constant 0 : i32
    %c0_i32_0 = arith.constant 0 : i32
    %c0_i32_1 = arith.constant 0 : i32
    return %c0_i32, %c0_i32_0 : i32, i32
  }
  func.func @transform_3(%arg0: i32) -> (i32, i32) {
    %c0_i32 = arith.constant 0 : i32
    %c0_i32_0 = arith.constant 0 : i32
    %c0_i32_1 = arith.constant 0 : i32
    return %c0_i32, %c0_i32_0 : i32, i32
  }
  func.func @transform_4(%arg0: i32) -> (i32, i32) {
    %c0_i32 = arith.constant 0 : i32
    %c0_i32_0 = arith.constant 0 : i32
    %c0_i32_1 = arith.constant 0 : i32
    return %c0_i32, %c0_i32_0 : i32, i32
  }
  func.func @transform_5(%arg0: i32) -> (i32, i32) {
    %c0_i32 = arith.constant 0 : i32
    %c0_i32_0 = arith.constant 0 : i32
    %c0_i32_1 = arith.constant 0 : i32
    return %c0_i32, %c0_i32_0 : i32, i32
  }
  func.func @transform_6(%arg0: i32) -> (i32, i32) {
    %c0_i32 = arith.constant 0 : i32
    %c0_i32_0 = arith.constant 0 : i32
    %c0_i32_1 = arith.constant 0 : i32
    return %c0_i32, %c0_i32_0 : i32, i32
  }
  func.func @transform_7(%arg0: i32) -> (i32, i32) {
    %c0_i32 = arith.constant 0 : i32
    %c0_i32_0 = arith.constant 0 : i32
    %c0_i32_1 = arith.constant 0 : i32
    return %c0_i32, %c0_i32_0 : i32, i32
  }
  func.func @transform_8(%arg0: i32) -> (i32, i32) {
    %c0_i32 = arith.constant 0 : i32
    %c0_i32_0 = arith.constant 0 : i32
    %c0_i32_1 = arith.constant 0 : i32
    return %c0_i32, %c0_i32_0 : i32, i32
  }
  func.func @transform_9(%arg0: i32) -> (i32, i32) {
    %c0_i32 = arith.constant 0 : i32
    %c0_i32_0 = arith.constant 0 : i32
    return %arg0, %c0_i32 : i32, i32
  }
}

</mosaic_0001>

<bundles_post_ra>
// kernel: _forward_impl.1
= control target key start
LH: loop header
LB: loop body
LE: loop exit
PB: predicated region body
PF: predicated region fallthrough
CT: control target
= control target key end

     0   :  { %14 = vsyncpa [#allocation3], 0  ;;  %s581_s0 = inlined_call_operand.vmem [shape: bf16[16,32], index: 0, kind: input, shape index: {}]   ;;  %s582_s1 = inlined_call_operand.vmem [shape: bf16[16,16], index: 1, kind: input, shape index: {}]   ;;  %s583_s2 = inlined_call_operand.vmem [shape: bf16[32,128], index: 2, kind: input, shape index: {}]   ;;  %s584_s3 = inlined_call_operand.vmem [shape: bf16[16,128], index: 3, kind: input, shape index: {}]   ;;  %s585_s4 = inlined_call_operand.vmem [shape: f32[1,128], index: 4, kind: input, shape index: {}]   ;;  %s586_s5 = inlined_call_operand.hbm [shape: bf16[128,128], index: 5, kind: input, shape index: {}]   ;;  %s587_s6 = inlined_call_operand.vmem [shape: f32[1,128], index: 6, kind: input, shape index: {}]   ;;  %s588_s7 = inlined_call_operand.hbm [shape: bf16[128,128], index: 7, kind: input, shape index: {}]   ;;  %s589_s8 = inlined_call_operand.vmem [shape: f32[1,128], index: 8, kind: input, shape index: {}]   ;;  %s590_s9 = inlined_call_operand.vmem [shape: f32[16,128], index: 9, kind: output, shape index: {}]  }
   0x1   :  { %s30_s11 = sshll.u32 %s586_s5, 4  ;;  %s31_s11 = int_to_ptr.hbm [resolvable:$true] %s30_s11 }
   0x2   :  { %15 = vsyncpa [#allocation5], 0  ;;  %s491_s12 = smov [#allocation2]   ;;  %s45_s16 = sshll.u32 %s588_s7, 4  ;;  %s46_s16 = int_to_ptr.hbm [resolvable:$true] %s45_s16 }
   0x3   :  { %s32_s13 = sshll.u32 %s491_s12, 4  ;;  %s492_s17 = smov 64   ;;  %s33_s13 = int_to_ptr.vmem [resolvable:$true] %s32_s13 }
   0x4   :  { %s493_s18 = smov 4   ;;  %s494_s19 = smov [#allocation4]  }
   0x5   :  { %38 = dma.hbm_to_vmem [thread:$0]  %s31_s11, 1024, %s33_s13, [#allocation3], %s492_s17, %s492_s17, %s493_s18  }
   0x6   :  { %s47_s20 = sshll.u32 %s494_s19, 4  ;;  %s48_s20 = int_to_ptr.vmem [resolvable:$true] %s47_s20 }
   0x7   :  { %53 = dma.hbm_to_vmem [thread:$0]  %s46_s16, 1024, %s48_s20, [#allocation5], %s492_s17, %s492_s17, %s493_s18  }
   0x8   :  { %487 = dma.done.wait [#allocation3], 1024  }
   0x9   :  { %488 = vsyncadd [#allocation3], 4294966272 }
   0xa   :  { %489 = dma.done.wait [#allocation5], 1024  }
   0xb   :  { %490 = vsyncadd [#allocation5], 4294966272  ;;  %v415_v0 = vld [vmem:[%s584_s3] sm:$0xff]  ;;  %v414_v1 = vld [vmem:[%s583_s2 + $0x8] sm:$0xff]  ;;  %vm87_vm0 = vcmask 130048   ;;  %vm122_vm1 = vcmask 261120  }
   0xc   :  { %v412_v2 = vld [vmem:[%s582_s1] sm:$0xff]  ;;  %v423_v3 = vld [vmem:[#allocation2 + $0x38] sm:$0xff]  ;;  %98 = vmatpush.bf16.msra.mxu0 %v415_v0  ;;  %132 = vmatpush.bf16.msra.mxu1 %v414_v1  ;;  %v422_v5 = vld [vmem:[#allocation2 + $0x30] sm:$0xff] }
   0xd   :  { %v413_v4 = vld [vmem:[%s583_s2] sm:$0xff]  ;;  %216 = vmatpush.bf16.msra.mxu2 %v423_v3  ;;  %v421_v7 = vld [vmem:[#allocation2 + $0x28] sm:$0xff]  ;;  %v419_v9 = vld [vmem:[#allocation2 + $0x18] sm:$0xff] }
   0xe   :  { %v411_v6 = vld [vmem:[%s581_s0] sm:$0xff]  ;;  %v418_v10 = vld [vmem:[#allocation2 + $0x10] sm:$0xff]  ;;  %v417_v11 = vld [vmem:[#allocation2 + $0x8] sm:$0xff] }
   0xf   :  { %333 = vmatmul.msk.bf16.vlgmr.msra.gmra.mxu0 %vm87_vm0, %v412_v2  ;;  %v420_v8 = vld [vmem:[#allocation2 + $0x20] sm:$0xff]  ;;  %v431_v13 = vld [vmem:[#allocation4 + $0x38] sm:$0xff]  ;;  %v430_v14 = vld [vmem:[#allocation4 + $0x30] sm:$0xff] }
  0x10   :  { %133 = vmatpush.bf16.msra.mxu1 %v413_v4  ;;  %v416_v12 = vld [vmem:[#allocation2] sm:$0xff]  ;;  %301 = vmatpush.bf16.msra.mxu3 %v431_v13  ;;  %v429_v15 = vld [vmem:[#allocation4 + $0x28] sm:$0xff]  ;;  %v427_v29 = vld [vmem:[#allocation4 + $0x18] sm:$0xff] }
  0x11   :  { %217 = vmatpush.bf16.msra.mxu2 %v422_v5  ;;  %v428_v16 = vld [vmem:[#allocation4 + $0x20] sm:$0xff]  ;;  %v426_v30 = vld [vmem:[#allocation4 + $0x10] sm:$0xff]  ;;  %v425_v31 = vld [vmem:[#allocation4 + $0x8] sm:$0xff] }
  0x12   :  { %v436_v20 = vld [vmem:[%s585_s4] ss:$0 sm:$0xff] }
  0x13   :  { %346 = vmatmul.msk.bf16.vlgmr.msra.gmra.mxu1 %vm122_vm1, %v411_v6  ;;  %v424_v32 = vld [vmem:[#allocation4] sm:$0xff] }
  0x14   :  { %302 = vmatpush.bf16.msra.mxu3 %v430_v14  ;;  %v437_v34 = vld [vmem:[%s587_s6] ss:$0 sm:$0xff] }
  0x15   :  { %218 = vmatpush.bf16.msra.mxu2 %v421_v7  ;;  %v438_v41 = vld [vmem:[%s589_s8] ss:$0 sm:$0xff] }
  0x18   :  { %303 = vmatpush.bf16.msra.mxu3 %v429_v15 }
  0x19   :  { %219 = vmatpush.bf16.msra.mxu2 %v420_v8 }
  0x1c   :  { %304 = vmatpush.bf16.msra.mxu3 %v428_v16 }
  0x1d   :  { %220 = vmatpush.bf16.msra.mxu2 %v419_v9 }
  0x20   :  { %305 = vmatpush.bf16.msra.mxu3 %v427_v29 }
  0x21   :  { %221 = vmatpush.bf16.msra.mxu2 %v418_v10 }
  0x24   :  { %306 = vmatpush.bf16.msra.mxu3 %v426_v30 }
  0x25   :  { %222 = vmatpush.bf16.msra.mxu2 %v417_v11 }
  0x28   :  { %307 = vmatpush.bf16.msra.mxu3 %v425_v31 }
  0x29   :  { %223 = vmatpush.bf16.msra.mxu2 %v416_v12 }
  0x2c   :  { %308 = vmatpush.bf16.msra.mxu3 %v424_v32 }
  0x8c   :  { %v100_v17 = vpop.f32.mrf.mxu0 }
  0x90   :  { %v135_v18 = vpop.f32.mrf.mxu1 }
  0x91   :  { %v136_v19 = vadd.f32 %v135_v18, %v100_v17 }
  0x93   :  { %v143_v23 = vadd.f32 %v436_v20, %v136_v19 }
  0x94   :  { %v102_v21 = vpop.f32.mrf.mxu0 }
  0x95   :  { %v145_v26 = vmax.f32 %v143_v23, 0.0 }
  0x98   :  { %v137_v22 = vpop.f32.mrf.mxu1 }
  0x99   :  { %v138_v24 = vadd.f32 %v137_v22, %v102_v21 }
  0x9b   :  { %v144_v25 = vadd.f32 %v436_v20, %v138_v24 }
  0x9d   :  { %v146_v27 = vmax.f32 %v144_v25, 0.0 }
  0x9f   :  { %v164_v28 = vpack.c.bf16 %v146_v27, %v145_v26 }
  0xa1   :  { %224 = vmatmul.bf16.vlgmr.msra.gmra.mxu2 %v164_v28 }
 0x124   :  { %v225_v33 = vpop.f32.mrf.mxu2 }
 0x125   :  { %v226_v35 = vadd.f32 %v437_v34, %v225_v33 }
 0x127   :  { %v230_v38 = vmax.f32 %v226_v35, 0.0 }
 0x12c   :  { %v227_v36 = vpop.f32.mrf.mxu2 }
 0x12d   :  { %v228_v37 = vadd.f32 %v437_v34, %v227_v36 }
 0x12f   :  { %v231_v39 = vmax.f32 %v228_v37, 0.0 }
 0x131   :  { %v249_v40 = vpack.c.bf16 %v231_v39, %v230_v38 }
 0x133   :  { %309 = vmatmul.bf16.vlgmr.msra.gmra.mxu3 %v249_v40 }
 0x1b6   :  { %v310_v42 = vpop.f32.mrf.mxu3 }
 0x1b7   :  { %v311_v43 = vadd.f32 %v438_v41, %v310_v42 }
 0x1b9   :  { %v315_v44 = vmax.f32 %v311_v43, 0.0 }
 0x1bb   :  { %317 = vst [vmem:[%s590_s9] sm:$0xff] %v315_v44 }
 0x1be   :  { %v312_v45 = vpop.f32.mrf.mxu3 }
 0x1bf   :  { %v313_v46 = vadd.f32 %v438_v41, %v312_v45 }
 0x1c1   :  { %v316_v47 = vmax.f32 %v313_v46, 0.0 }
 0x1c3   :  { %318 = vst [vmem:[%s590_s9 + $0x8] sm:$0xff] %v316_v47 }
 0x1c4   :  { %323 = vsyncpa [#allocation3], 1 }
 0x1c5   :  { %324 = vsyncpa [#allocation5], 1 }

</bundles_post_ra>
